<compile_context>
chip_gen: v7x
topology: tpu7x:2x2x1
jax: 0.10.0
libtpu: 0.0.40
codegen_flags: <defaults>
</compile_context>

<pallas_src>
import math

import jax
import jax.numpy as jnp
from jax.experimental import pallas as pl
from jax.experimental.pallas import tpu as pltpu

_DEG2RAD = math.pi / 180.0
_EARTH_RADIUS = 6371000.0
_INV_W = 1.0 / 1920.0
_INV_H = 1.0 / 1080.0

_LANES = 128
_SUBLANES = 8


# --------------------------------------------------------------------------
# tiling helpers
# --------------------------------------------------------------------------
def _cdiv(a, b):
    return (a + b - 1) // b


def _round_up(x, m):
    return _cdiv(x, m) * m


def _plan_tiles(n, *, max_rows_per_step=2048, min_steps=2):
    """Plan a sublane-dense tiling of a batch of n elements.

    Returns (ts, steps, n_pad) where:
      * each grid step processes a (ts, 128) tile (ts multiple of 8),
      * grid = (steps,),
      * n_pad = ts * steps * 128, with padding bounded by a few sublane rows
        (never a whole 32K-lane tile like the old round_up(n, tb) scheme).
    """
    rows = _cdiv(n, _LANES)
    rows_pad = _round_up(rows, _SUBLANES)
    steps = max(_cdiv(rows_pad, max_rows_per_step), 1)
    # v7x: make sure both TensorCores get a grid step (if there is enough work
    # for each step to still be at least one sublane tile).
    if steps < min_steps and rows_pad >= min_steps * _SUBLANES:
        steps = min_steps
    ts = _round_up(_cdiv(rows_pad, steps), _SUBLANES)
    return ts, steps, ts * steps * _LANES


def _to_tiles(soa, n_pad):
    """(C, n) struct-of-arrays -> (C, n_pad//128, 128) sublane/lane tiles."""
    c, n = soa.shape
    padded = jnp.pad(soa, ((0, 0), (0, n_pad - n)))
    return padded.reshape(c, n_pad // _LANES, _LANES)


# --------------------------------------------------------------------------
# Pallas kernels
# --------------------------------------------------------------------------
def _calibrate_kernel(params_ref, gps_ref, pix_ref):
    """Fused NodeCalibrator forward for one (TS, 128) tile of objects.

    params_ref: (19,) f32 in SMEM
        [0:9]   rotation matrix R (row-major)
        [9:12]  node position (cartesian)
        [12:15] ox, oy, oz
        [15:19] fx, fy, cx, cy
    gps_ref: (3, TS, 128)  planes = lat_deg, lon_deg, alt  (batch on sublane x lane)
    pix_ref: (2, TS, 128)  planes = u, v
    """
    lat = gps_ref[0] * _DEG2RAD          # (TS, 128) full vregs
    lon = gps_ref[1] * _DEG2RAD
    alt = gps_ref[2]

    cl, sl = jnp.cos(lat), jnp.sin(lat)
    co, so = jnp.cos(lon), jnp.sin(lon)
    radius = _EARTH_RADIUS + alt

    # GPS2Cartesian followed by Global2Local (subtract node position).
    dx = radius * cl * co - params_ref[9]
    dy = radius * cl * so - params_ref[10]
    dz = radius * sl - params_ref[11]

    # (obj - node) @ R, closed form (VPU, not MXU).
    lx = dx * params_ref[0] + dy * params_ref[3] + dz * params_ref[6]
    ly = dx * params_ref[1] + dy * params_ref[4] + dz * params_ref[7]
    lz = dx * params_ref[2] + dy * params_ref[5] + dz * params_ref[8]

    # Local2Pixel.
    x_cam = ly + params_ref[13]          # + oy
    y_cam = lz + params_ref[14]          # + oz
    z_cam = lx + params_ref[12]          # + ox
    inv_z = pl.reciprocal(z_cam, approx=True)   # EUP vrcp; ~1e-4 rel err, fine here

    # Full, unmasked (TS, 128) stores.
    pix_ref[0] = (x_cam * inv_z * params_ref[15] + params_ref[17]) * _INV_W
    pix_ref[1] = (y_cam * inv_z * params_ref[16] + params_ref[18]) * _INV_H


def _euler_rot_kernel(ang_ref, rot_ref):
    """Batched Euler -> rotation matrix, sublane-dense layout.

    ang_ref: (3, TS, 128) planes = roll, pitch, yaw
    rot_ref: (9, TS, 128) plane k = element (k // 3, k % 3) of R = Y @ P @ Rroll
    """
    roll = ang_ref[0]
    pitch = ang_ref[1]
    yaw = ang_ref[2]

    cr, sr = jnp.cos(roll), jnp.sin(roll)
    cp, sp = jnp.cos(pitch), jnp.sin(pitch)
    cy, sy = jnp.cos(yaw), jnp.sin(yaw)

    sp_sr = sp * sr
    sp_cr = sp * cr

    rot_ref[0] = cy * cp
    rot_ref[1] = cy * sp_sr - sy * cr
    rot_ref[2] = cy * sp_cr + sy * sr
    rot_ref[3] = sy * cp
    rot_ref[4] = sy * sp_sr + cy * cr
    rot_ref[5] = sy * sp_cr - cy * sr
    rot_ref[6] = -sp
    rot_ref[7] = cp * sr
    rot_ref[8] = cp * cr


# --------------------------------------------------------------------------
# pure-JAX references (also used as the tiny-batch fast paths)
# --------------------------------------------------------------------------
def _gps2cart_ref(gps, rad=_EARTH_RADIUS):
    lat = jnp.deg2rad(gps[:, 0])
    lon = jnp.deg2rad(gps[:, 1])
    r = rad + gps[:, 2]
    return jnp.stack([r * jnp.cos(lat) * jnp.cos(lon),
                      r * jnp.cos(lat) * jnp.sin(lon),
                      r * jnp.sin(lat)], axis=1)


def _euler_to_rot_ref(angles):
    """Mirrors the PyTorch bmm(Y, P) @ R formulation."""
    roll, pitch, yaw = angles[:, 0], angles[:, 1], angles[:, 2]
    cr, sr = jnp.cos(roll), jnp.sin(roll)
    cp, sp = jnp.cos(pitch), jnp.sin(pitch)
    cy, sy = jnp.cos(yaw), jnp.sin(yaw)
    one, zero = jnp.ones_like(roll), jnp.zeros_like(roll)
    r_mat = jnp.stack([one, zero, zero, zero, cr, -sr, zero, sr, cr], -1).reshape(-1, 3, 3)
    p_mat = jnp.stack([cp, zero, sp, zero, one, zero, -sp, zero, cp], -1).reshape(-1, 3, 3)
    y_mat = jnp.stack([cy, -sy, zero, sy, cy, zero, zero, zero, one], -1).reshape(-1, 3, 3)
    return jnp.einsum("bij,bjk->bik",
                      jnp.einsum("bij,bjk->bik", y_mat, p_mat), r_mat)


def _node_calibrator_ref(calib, obj_pos):
    rot = _euler_to_rot_ref(calib.angles)[0]
    cart = _gps2cart_ref(jnp.asarray(obj_pos, jnp.float32))
    local = (cart - calib.node_pos) @ rot
    x_cam = local[:, 1] + calib.oy
    y_cam = local[:, 2] + calib.oz
    z_cam = local[:, 0] + calib.ox
    u = (x_cam / z_cam * calib.fx + calib.cx) / 1920.0
    v = (y_cam / z_cam * calib.fy + calib.cy) / 1080.0
    return jnp.stack([u, v], axis=1)


# --------------------------------------------------------------------------
# wrappers
# --------------------------------------------------------------------------
def euler_to_rotation_matrix(angles, *, min_pallas_batch=4096, max_rows_per_step=1024):
    """angles: (B, 3) [roll, pitch, yaw] -> (B, 3, 3) rotation matrices."""
    angles = jnp.asarray(angles, jnp.float32)
    b = angles.shape[0]
    if b < min_pallas_batch:
        # Small batches: pad + relayout + launch dominate; let XLA fuse the
        # closed form into the surrounding graph.
        return _euler_to_rot_ref(angles)

    ts, steps, b_pad = _plan_tiles(b, max_rows_per_step=max_rows_per_step)
    ang_tiles = _to_tiles(angles.T, b_pad)                     # (3, rows, 128)
    cost = pl.CostEstimate(flops=30 * b_pad, transcendentals=6 * b_pad,
                           bytes_accessed=(3 + 9) * 4 * b_pad)
    rot_tiles = pl.pallas_call(
        _euler_rot_kernel,
        out_shape=jax.ShapeDtypeStruct((9, b_pad // _LANES, _LANES), jnp.float32),
        grid=(steps,),
        in_specs=[pl.BlockSpec((3, ts, _LANES), lambda i: (0, i, 0))],
        out_specs=pl.BlockSpec((9, ts, _LANES), lambda i: (0, i, 0)),
        compiler_params=pltpu.CompilerParams(
            dimension_semantics=("parallel",)),                # v7x: 2 TCs
        cost_estimate=cost,
    )(ang_tiles)
    flat = rot_tiles.reshape(9, b_pad)[:, :b]                  # (9, B) SoA
    return flat.T.reshape(b, 3, 3)


class NodeCalibrator:
    """JAX/Pallas port of the PyTorch NodeCalibrator module (forward only)."""

    def __init__(self, node_pos, camera_info, angles=None, rad=_EARTH_RADIUS):
        node_pos = jnp.asarray(node_pos, jnp.float32)
        self.node_pos = _gps2cart_ref(node_pos, rad)           # buffer, (1, 3)
        self.angles = (jnp.zeros((1, 3), jnp.float32) if angles is None
                       else jnp.asarray(angles, jnp.float32))  # nn.Parameter
        self.ox = jnp.float32(1.0)                             # Local2Pixel params
        self.oy = jnp.float32(1.0)
        self.oz = jnp.float32(1.0)
        left = camera_info["left"]
        self.fx = jnp.float32(left["fx"])
        self.fy = jnp.float32(left["fy"])
        self.cx = jnp.float32(left["cx"])
        self.cy = jnp.float32(left["cy"])

    def _params(self):
        # angles has batch 1 -> pure-JAX Euler->R (Pallas pointless at B=1).
        rot = _euler_to_rot_ref(self.angles)[0]                # (3, 3)
        return jnp.concatenate([
            rot.reshape(-1),
            self.node_pos.reshape(-1),
            jnp.stack([self.ox, self.oy, self.oz,
                       self.fx, self.fy, self.cx, self.cy]),
        ]).astype(jnp.float32)                                 # (19,)

    def calibrate_soa(self, gps_soa, *, max_rows_per_step=2048):
        """Struct-of-arrays entry point: gps_soa (3, N) -> pixels (2, N).

        Callers that keep object state as SoA avoid the AoS<->SoA transposes
        entirely; the kernel itself only touches 20 bytes/object of HBM.
        """
        gps_soa = jnp.asarray(gps_soa, jnp.float32)
        n = gps_soa.shape[1]
        ts, steps, n_pad = _plan_tiles(n, max_rows_per_step=max_rows_per_step)
        gps_tiles = _to_tiles(gps_soa, n_pad)                  # (3, rows, 128)

        # Per-step double-buffered footprint at ts=2048:
        #   in  2 * 3*2048*128*4 B = 6 MiB, out 2 * 2*2048*128*4 B = 4 MiB
        # -> comfortably under v7x's 32 MiB scoped-VMEM default.
        cost = pl.CostEstimate(flops=40 * n_pad, transcendentals=5 * n_pad,
                               bytes_accessed=(3 + 2) * 4 * n_pad)
        pix_tiles = pl.pallas_call(
            _calibrate_kernel,
            out_shape=jax.ShapeDtypeStruct((2, n_pad // _LANES, _LANES), jnp.float32),
            grid=(steps,),
            in_specs=[
                pl.BlockSpec(memory_space=pltpu.MemorySpace.SMEM),      # 19 scalars
                pl.BlockSpec((3, ts, _LANES), lambda i: (0, i, 0)),     # GPS tile
            ],
            out_specs=pl.BlockSpec((2, ts, _LANES), lambda i: (0, i, 0)),
            compiler_params=pltpu.CompilerParams(
                dimension_semantics=("parallel",)),            # v7x: 2 TCs
            cost_estimate=cost,
        )(self._params(), gps_tiles)
        return pix_tiles.reshape(2, n_pad)[:, :n]              # (2, N)

    def __call__(self, obj_pos, *, min_pallas_batch=2048, max_rows_per_step=2048):
        obj_pos = jnp.asarray(obj_pos, jnp.float32)            # (N, 3) GPS, AoS
        n = obj_pos.shape[0]
        if n < min_pallas_batch:
            # Tiny batches: pad + transpose + launch dominate; XLA fuses the
            # closed form just fine.
            return _node_calibrator_ref(self, obj_pos)
        pix_soa = self.calibrate_soa(obj_pos.T, max_rows_per_step=max_rows_per_step)
        return pix_soa.T                                       # (N, 2) pixels


# --------------------------------------------------------------------------
# self-test
# --------------------------------------------------------------------------
if __name__ == "__main__":
    key = jax.random.PRNGKey(0)
    k_lat, k_lon, k_alt, k_ang = jax.random.split(key, 4)

    camera_info = {"left": {"fx": 1000.0, "fy": 1000.0, "cx": 960.0, "cy": 540.0}}
    node_pos_gps = jnp.array([[0.0, 0.0, 10.0]], dtype=jnp.float32)
    angles = jnp.array([[0.02, -0.015, 0.03]], dtype=jnp.float32)   # "trained" value

    calib = NodeCalibrator(node_pos_gps, camera_info, angles=angles)

    # A small batch of object GPS positions a few km from the node, kept at
    # altitude so the projective division stays well-conditioned in float32.
    N = 16
    lat = 0.3 + 0.3 * jax.random.uniform(k_lat, (N,), dtype=jnp.float32)
    lon = -0.2 + 0.4 * jax.random.uniform(k_lon, (N,), dtype=jnp.float32)
    alt = 5000.0 + 5000.0 * jax.random.uniform(k_alt, (N,), dtype=jnp.float32)
    obj_pos = jnp.stack([lat, lon, alt], axis=1)                    # (N, 3)

    ref_pix = _node_calibrator_ref(calib, obj_pos)

    # 1) Force the Pallas path (sublane-dense fused kernel) even at small N.
    pixels = jax.block_until_ready(calib(obj_pos, min_pallas_batch=0))
    assert pixels.shape == (N, 2)
    # float32 cancellation at Earth-radius scale (~1 ulp of 6.4e6 m) dominates
    # any kernel-vs-XLA trig / approx-reciprocal difference; a few 1e-3 of a
    # normalized pixel is the expected noise floor.
    assert jnp.allclose(pixels, ref_pix, atol=2e-2, rtol=2e-2), "pixel mismatch (pallas)"

    # 2) Tiny-batch pure-JAX fast path (the default for N < 2048).
    pixels_fast = jax.block_until_ready(calib(obj_pos))
    assert jnp.allclose(pixels_fast, ref_pix, atol=1e-5, rtol=1e-5), "pixel mismatch (fast path)"

    # 3) Exercise the sublane-dense batched Euler->rotation kernel against the
    #    bmm-style reference (force the Pallas path at a small-ish batch).
    B = 1024
    ang_b = jax.random.uniform(k_ang, (B, 3), dtype=jnp.float32,
                               minval=-math.pi, maxval=math.pi)
    rot_b = jax.block_until_ready(
        euler_to_rotation_matrix(ang_b, min_pallas_batch=0))
    assert rot_b.shape == (B, 3, 3)
    assert jnp.allclose(rot_b, _euler_to_rot_ref(ang_b), atol=1e-5), "rotation mismatch"

    print("KERNEL_OK")
</pallas_src>

<mosaic_0001>
module attributes {stable_mosaic.version = 11 : i64} {
  func.func @_calibrate_kernel(%arg0: i32, %arg1: memref<19xf32, #tpu.memory_space<smem>>, %arg2: memref<3x8x128xf32, #tpu.memory_space<vmem>>, %arg3: memref<2x8x128xf32, #tpu.memory_space<vmem>>) attributes {dimension_semantics = [#tpu.dimension_semantics<parallel>], iteration_bounds = array<i64: 1>, scalar_prefetch = 0 : i64, scratch_operands = 0 : i64, tpu.core_type = #tpu.core_type<tc>, window_params = [{transform_indices = @transform_0, window_bounds = array<i64: 19>}, {transform_indices = @transform_1, window_bounds = array<i64: 3, 8, 128>}, {transform_indices = @transform_2, window_bounds = array<i64: 2, 8, 128>}]} {
    %c0 = arith.constant 0 : index
    %c0_0 = arith.constant 0 : index
    %c0_1 = arith.constant 0 : index
    %0 = vector.load %arg2[%c0, %c0_0, %c0_1] : memref<3x8x128xf32, #tpu.memory_space<vmem>>, vector<1x8x128xf32>
    %1 = vector.shape_cast %0 : vector<1x8x128xf32> to vector<8x128xf32>
    %cst = arith.constant 0.0174532924 : f32
    %2 = vector.broadcast %cst : f32 to vector<8x128xf32>
    %3 = arith.mulf %1, %2 : vector<8x128xf32>
    %c1 = arith.constant 1 : index
    %c0_2 = arith.constant 0 : index
    %c0_3 = arith.constant 0 : index
    %4 = vector.load %arg2[%c1, %c0_2, %c0_3] : memref<3x8x128xf32, #tpu.memory_space<vmem>>, vector<1x8x128xf32>
    %5 = vector.shape_cast %4 : vector<1x8x128xf32> to vector<8x128xf32>
    %cst_4 = arith.constant 0.0174532924 : f32
    %6 = vector.broadcast %cst_4 : f32 to vector<8x128xf32>
    %7 = arith.mulf %5, %6 : vector<8x128xf32>
    %c2 = arith.constant 2 : index
    %c0_5 = arith.constant 0 : index
    %c0_6 = arith.constant 0 : index
    %8 = vector.load %arg2[%c2, %c0_5, %c0_6] : memref<3x8x128xf32, #tpu.memory_space<vmem>>, vector<1x8x128xf32>
    %9 = vector.shape_cast %8 : vector<1x8x128xf32> to vector<8x128xf32>
    %10 = math.cos %3 : vector<8x128xf32>
    %11 = math.sin %3 : vector<8x128xf32>
    %12 = math.cos %7 : vector<8x128xf32>
    %13 = math.sin %7 : vector<8x128xf32>
    %cst_7 = arith.constant 6.371000e+06 : f32
    %14 = vector.broadcast %cst_7 : f32 to vector<8x128xf32>
    %15 = arith.addf %14, %9 : vector<8x128xf32>
    %16 = arith.mulf %15, %10 : vector<8x128xf32>
    %17 = arith.mulf %16, %12 : vector<8x128xf32>
    %c9 = arith.constant 9 : index
    %18 = memref.load %arg1[%c9] : memref<19xf32, #tpu.memory_space<smem>>
    %19 = vector.broadcast %18 : f32 to vector<8x128xf32>
    %20 = arith.subf %17, %19 : vector<8x128xf32>
    %21 = arith.mulf %15, %10 : vector<8x128xf32>
    %22 = arith.mulf %21, %13 : vector<8x128xf32>
    %c10 = arith.constant 10 : index
    %23 = memref.load %arg1[%c10] : memref<19xf32, #tpu.memory_space<smem>>
    %24 = vector.broadcast %23 : f32 to vector<8x128xf32>
    %25 = arith.subf %22, %24 : vector<8x128xf32>
    %26 = arith.mulf %15, %11 : vector<8x128xf32>
    %c11 = arith.constant 11 : index
    %27 = memref.load %arg1[%c11] : memref<19xf32, #tpu.memory_space<smem>>
    %28 = vector.broadcast %27 : f32 to vector<8x128xf32>
    %29 = arith.subf %26, %28 : vector<8x128xf32>
    %c0_8 = arith.constant 0 : index
    %30 = memref.load %arg1[%c0_8] : memref<19xf32, #tpu.memory_space<smem>>
    %31 = vector.broadcast %30 : f32 to vector<8x128xf32>
    %32 = arith.mulf %20, %31 : vector<8x128xf32>
    %c3 = arith.constant 3 : index
    %33 = memref.load %arg1[%c3] : memref<19xf32, #tpu.memory_space<smem>>
    %34 = vector.broadcast %33 : f32 to vector<8x128xf32>
    %35 = arith.mulf %25, %34 : vector<8x128xf32>
    %36 = arith.addf %32, %35 : vector<8x128xf32>
    %c6 = arith.constant 6 : index
    %37 = memref.load %arg1[%c6] : memref<19xf32, #tpu.memory_space<smem>>
    %38 = vector.broadcast %37 : f32 to vector<8x128xf32>
    %39 = arith.mulf %29, %38 : vector<8x128xf32>
    %40 = arith.addf %36, %39 : vector<8x128xf32>
    %c1_9 = arith.constant 1 : index
    %41 = memref.load %arg1[%c1_9] : memref<19xf32, #tpu.memory_space<smem>>
    %42 = vector.broadcast %41 : f32 to vector<8x128xf32>
    %43 = arith.mulf %20, %42 : vector<8x128xf32>
    %c4 = arith.constant 4 : index
    %44 = memref.load %arg1[%c4] : memref<19xf32, #tpu.memory_space<smem>>
    %45 = vector.broadcast %44 : f32 to vector<8x128xf32>
    %46 = arith.mulf %25, %45 : vector<8x128xf32>
    %47 = arith.addf %43, %46 : vector<8x128xf32>
    %c7 = arith.constant 7 : index
    %48 = memref.load %arg1[%c7] : memref<19xf32, #tpu.memory_space<smem>>
    %49 = vector.broadcast %48 : f32 to vector<8x128xf32>
    %50 = arith.mulf %29, %49 : vector<8x128xf32>
    %51 = arith.addf %47, %50 : vector<8x128xf32>
    %c2_10 = arith.constant 2 : index
    %52 = memref.load %arg1[%c2_10] : memref<19xf32, #tpu.memory_space<smem>>
    %53 = vector.broadcast %52 : f32 to vector<8x128xf32>
    %54 = arith.mulf %20, %53 : vector<8x128xf32>
    %c5 = arith.constant 5 : index
    %55 = memref.load %arg1[%c5] : memref<19xf32, #tpu.memory_space<smem>>
    %56 = vector.broadcast %55 : f32 to vector<8x128xf32>
    %57 = arith.mulf %25, %56 : vector<8x128xf32>
    %58 = arith.addf %54, %57 : vector<8x128xf32>
    %c8 = arith.constant 8 : index
    %59 = memref.load %arg1[%c8] : memref<19xf32, #tpu.memory_space<smem>>
    %60 = vector.broadcast %59 : f32 to vector<8x128xf32>
    %61 = arith.mulf %29, %60 : vector<8x128xf32>
    %62 = arith.addf %58, %61 : vector<8x128xf32>
    %c13 = arith.constant 13 : index
    %63 = memref.load %arg1[%c13] : memref<19xf32, #tpu.memory_space<smem>>
    %64 = vector.broadcast %63 : f32 to vector<8x128xf32>
    %65 = arith.addf %51, %64 : vector<8x128xf32>
    %c14 = arith.constant 14 : index
    %66 = memref.load %arg1[%c14] : memref<19xf32, #tpu.memory_space<smem>>
    %67 = vector.broadcast %66 : f32 to vector<8x128xf32>
    %68 = arith.addf %62, %67 : vector<8x128xf32>
    %c12 = arith.constant 12 : index
    %69 = memref.load %arg1[%c12] : memref<19xf32, #tpu.memory_space<smem>>
    %70 = vector.broadcast %69 : f32 to vector<8x128xf32>
    %71 = arith.addf %40, %70 : vector<8x128xf32>
    %72 = tpu.reciprocal %71 {approx = true} : vector<8x128xf32> -> vector<8x128xf32>
    %73 = arith.mulf %65, %72 : vector<8x128xf32>
    %c15 = arith.constant 15 : index
    %74 = memref.load %arg1[%c15] : memref<19xf32, #tpu.memory_space<smem>>
    %75 = vector.broadcast %74 : f32 to vector<8x128xf32>
    %76 = arith.mulf %73, %75 : vector<8x128xf32>
    %c17 = arith.constant 17 : index
    %77 = memref.load %arg1[%c17] : memref<19xf32, #tpu.memory_space<smem>>
    %78 = vector.broadcast %77 : f32 to vector<8x128xf32>
    %79 = arith.addf %76, %78 : vector<8x128xf32>
    %cst_11 = arith.constant 5.2083336E-4 : f32
    %80 = vector.broadcast %cst_11 : f32 to vector<8x128xf32>
    %81 = arith.mulf %79, %80 : vector<8x128xf32>
    %c0_12 = arith.constant 0 : index
    %c0_13 = arith.constant 0 : index
    %c0_14 = arith.constant 0 : index
    %82 = vector.load %arg3[%c0_12, %c0_13, %c0_14] : memref<2x8x128xf32, #tpu.memory_space<vmem>>, vector<1x8x128xf32>
    %83 = vector.shape_cast %82 : vector<1x8x128xf32> to vector<8x128xf32>
    %84 = vector.shape_cast %81 : vector<8x128xf32> to vector<1x8x128xf32>
    tpu.vector_store %arg3[%c0_12, %c0_13, %c0_14], %84 {strides = array<i32>} : memref<2x8x128xf32, #tpu.memory_space<vmem>>, vector<1x8x128xf32>,
    %85 = arith.mulf %68, %72 : vector<8x128xf32>
    %c16 = arith.constant 16 : index
    %86 = memref.load %arg1[%c16] : memref<19xf32, #tpu.memory_space<smem>>
    %87 = vector.broadcast %86 : f32 to vector<8x128xf32>
    %88 = arith.mulf %85, %87 : vector<8x128xf32>
    %c18 = arith.constant 18 : index
    %89 = memref.load %arg1[%c18] : memref<19xf32, #tpu.memory_space<smem>>
    %90 = vector.broadcast %89 : f32 to vector<8x128xf32>
    %91 = arith.addf %88, %90 : vector<8x128xf32>
    %cst_15 = arith.constant 9.25925909E-4 : f32
    %92 = vector.broadcast %cst_15 : f32 to vector<8x128xf32>
    %93 = arith.mulf %91, %92 : vector<8x128xf32>
    %c1_16 = arith.constant 1 : index
    %c0_17 = arith.constant 0 : index
    %c0_18 = arith.constant 0 : index
    %94 = vector.load %arg3[%c1_16, %c0_17, %c0_18] : memref<2x8x128xf32, #tpu.memory_space<vmem>>, vector<1x8x128xf32>
    %95 = vector.shape_cast %94 : vector<1x8x128xf32> to vector<8x128xf32>
    %96 = vector.shape_cast %93 : vector<8x128xf32> to vector<1x8x128xf32>
    tpu.vector_store %arg3[%c1_16, %c0_17, %c0_18], %96 {strides = array<i32>} : memref<2x8x128xf32, #tpu.memory_space<vmem>>, vector<1x8x128xf32>,
    return
  }
  func.func @transform_0(%arg0: i32) -> i32 {
    %c0_i32 = arith.constant 0 : i32
    %c0_i32_0 = arith.constant 0 : i32
    return %c0_i32 : i32
  }
  func.func @transform_1(%arg0: i32) -> (i32, i32, i32) {
    %c0_i32 = arith.constant 0 : i32
    %c0_i32_0 = arith.constant 0 : i32
    %c0_i32_1 = arith.constant 0 : i32
    return %c0_i32, %arg0, %c0_i32_0 : i32, i32, i32
  }
  func.func @transform_2(%arg0: i32) -> (i32, i32, i32) {
    %c0_i32 = arith.constant 0 : i32
    %c0_i32_0 = arith.constant 0 : i32
    %c0_i32_1 = arith.constant 0 : i32
    return %c0_i32, %arg0, %c0_i32_0 : i32, i32, i32
  }
}

</mosaic_0001>

<bundles_post_ra>
// kernel: tpu_custom_call.1
= control target key start
LH: loop header
LB: loop body
LE: loop exit
PB: predicated region body
PF: predicated region fallthrough
CT: control target
= control target key end

     0   :  { %7 = vsyncpa [#allocation5], 0  ;;  %s850_s0 = inlined_call_operand.hbm [shape: f32[19], index: 0, kind: input, shape index: {}]   ;;  %s851_s1 = inlined_call_operand.hbm [shape: f32[3,8,128], index: 1, kind: input, shape index: {}]   ;;  %s852_s2 = inlined_call_operand.hbm [shape: f32[2,8,128], index: 2, kind: output, shape index: {}]  }
   0x1   :  { %8 = vsyncpa [#allocation3], 0 }
   0x2   :  { %9 = vsyncpa [#allocation4], 0  ;;  %s615_s11 = scalar_lea.hbm %s850_s0, 16 }
   0x3   :  { %p616_p0 = scmp.ne.s32.totalorder %s850_s0, %s615_s11  ;;  %p619_p1 = scmp.lt.u32.totalorder %s615_s11, %s850_s0 }
   0x5   :  { %p621_p2 = pnand %p619_p1, %p616_p0 }
   0x7   :  { %624 = shalt.err (!%p621_p2)
}
   0x8   :  { %s675_s16 = smov [#allocation2]   ;;  %s676_s19 = smov [#allocation6]  }
   0x9   :  { %17 = dma.hbm_to_smem %s850_s0, 16, %s675_s16, [#allocation5]  }
   0xa   :  { %s23_s20 = sshll.u32 %s676_s19, 4  ;;  %s625_s23 = scalar_lea.hbm %s851_s1, 384  ;;  %s24_s20 = int_to_ptr.vmem [resolvable:$true] %s23_s20 }
   0xb   :  { %p626_p3 = scmp.ne.s32.totalorder %s851_s1, %s625_s23  ;;  %p629_p4 = scmp.lt.u32.totalorder %s625_s23, %s851_s1 }
   0xd   :  { %p631_p5 = pnand %p629_p4, %p626_p3 }
   0xf   :  { %634 = shalt.err (!%p631_p5)
}
  0x10   :  { %s635_s28 = scalar_lea.vmem %s24_s20, 384  ;;  %p640_p7 = scmp.lt.s32.totalorder %s24_s20, %s24_s20 }
  0x11   :  { %p636_p6 = scmp.ne.s32.totalorder %s24_s20, %s635_s28  ;;  %p641_p8 = scmp.lt.s32.totalorder %s635_s28, %s635_s28 }
  0x13   :  { %p642_p9 = por %p641_p8, %p640_p7 }
  0x15   :  { %p643_p10 = pnand %p642_p9, %p636_p6 }
  0x17   :  { %646 = shalt.err (!%p643_p10)
}
  0x18   :  { %s677_s0 = smov 128   ;;  %s678_s29 = smov 8  }
  0x19   :  { %29 = dma.hbm_to_vmem [thread:$0]  %s851_s1, 384, %s24_s20, [#allocation3], %s677_s0, %s677_s0, %s678_s29  }
  0x1a   :  { %669 = dma.done.wait [#allocation5], 16  }
  0x1b   :  { %670 = vsyncadd [#allocation5], 4294967280 }
  0x1c   :  { %671 = dma.done.wait [#allocation3], 384  }
  0x1d   :  { %672 = vsyncadd [#allocation3], 4294966912 }
  0x1e   :  { %36 = sfence }
  0x1f   :  { %v37_v0 = vld [vmem:[#allocation6] sm:$0xff]  ;;  %v40_v1 = vld [vmem:[#allocation6 + $0x8] sm:$0xff]  ;;  %v679_v26 = vmov 683565275   ;;  %v680_v28 = vmov 2475754826  }
  0x20   :  { %v728_v2 = vmul.f32 0.017453292, %v37_v0  ;;  %v730_v3 = vmul.f32 0.017453292, %v40_v1  ;;  %v681_v30 = vmov 2131351028  }
  0x21   :  { %v682_v32 = vmov 2102212464   ;;  %v683_v34 = vmov 920167782   ;;  %v684_v42 = vmov 1326507024  }
  0x22   :  { %v44_v4 = vand.u32 2147483647, %v728_v2  ;;  %v47_v5 = vand.u32 2139095040, %v728_v2  ;;  %v251_v6 = vand.u32 2147483647, %v730_v3  ;;  %v254_v7 = vand.u32 2139095040, %v730_v3 }
  0x23   :  { %vm46_vm14 = vcmp.lt.s32.totalorder %v728_v2, 0  ;;  %s796_s1 = sld [smem:[#allocation2 + $0xb]]  ;;  %s799_s4 = sld [smem:[#allocation2 + $0x9]] }
  0x24   :  { %v48_v8 = vshrl.u32 %v47_v5, 23  ;;  %v51_v9 = vand.u32 8388607, %v44_v4  ;;  %v255_v10 = vshrl.u32 %v254_v7, 23  ;;  %v258_v11 = vand.u32 8388607, %v251_v6 }
  0x25   :  { %vm45_vm15 = vcmp.le.f32.partialorder %v44_v4, 0.7853982  ;;  %s801_s5 = sld [smem:[#allocation2 + $0xa]]  ;;  %s803_s6 = sld [smem:[#allocation2]] }
  0x26   :  { %v552_v12 = vadd.s32 4294967169, %v48_v8  ;;  %v560_v13 = vadd.s32 4294967169, %v255_v10  ;;  %v52_v15 = vor.u32 8388608, %v51_v9  ;;  %v259_v16 = vor.u32 8388608, %v258_v11  ;;  %s805_s7 = sld [smem:[#allocation2 + $0x3]]  ;;  %s807_s8 = sld [smem:[#allocation2 + $0x6]] }
  0x27   :  { %s809_s9 = sld [smem:[#allocation2 + $0x1]]  ;;  %s811_s10 = sld [smem:[#allocation2 + $0x4]] }
  0x28   :  { %v54_v14 = vadd.s32 1, %v552_v12  ;;  %v261_v17 = vadd.s32 1, %v560_v13  ;;  %v740_v22 = vshll.u32 %v52_v15, 8  ;;  %v742_v24 = vshll.u32 %v259_v16, 8  ;;  %s814_s11 = sld [smem:[#allocation2 + $0x2]]  ;;  %s816_s12 = sld [smem:[#allocation2 + $0x5]] }
  0x29   :  { %s819_s13 = sld [smem:[#allocation2 + $0xc]]  ;;  %s575_s14 = sld [smem:[#allocation2 + $0x7]] }
  0x2a   :  { %vm55_vm0 = vcmp.gt.s32.totalorder %v54_v14, 0  ;;  %vm262_vm1 = vcmp.gt.s32.totalorder %v261_v17, 0  ;;  %s578_s15 = sld [smem:[#allocation2 + $0x8]]  ;;  %s579_s16 = sld [smem:[#allocation2 + $0xd]] }
  0x2b   :  { %v56_v18 = vsel %vm55_vm0, %v54_v14, 0  ;;  %v263_v21 = vsel %vm262_vm1, %v261_v17, 0  ;;  %vm253_vm0 = vcmp.lt.s32.totalorder %v730_v3, 0  ;;  %vm252_vm1 = vcmp.le.f32.partialorder %v251_v6, 0.7853982  ;;  %s580_s17 = sld [smem:[#allocation2 + $0xe]] }
  0x2c   :  { %v57_v19 = vshrl.u32 %v56_v18, 5  ;;  %v58_v20 = vand.u32 31, %v56_v18  ;;  %v265_v23 = vand.u32 31, %v263_v21  ;;  %v744_v36 = vshrl.u32 %v263_v21, 5  ;;  %s582_s18 = sld [smem:[#allocation2 + $0xf]]  ;;  %s584_s19 = sld [smem:[#allocation2 + $0x10]] }
  0x2d   :  { %s583_s20 = sld [smem:[#allocation2 + $0x11]]  ;;  %s585_s21 = sld [smem:[#allocation2 + $0x12]] }
  0x2e   :  { %v59_v25 = vsub.s32 32, %v58_v20  ;;  %v61_v27 = vshll.u32 %v679_v26, %v58_v20  ;;  %v64_v29 = vshll.u32 %v680_v28, %v58_v20  ;;  %v67_v31 = vshll.u32 %v681_v30, %v58_v20  ;;  %s685_s22 = smov [#allocation7]  }
  0x2f   :  { %v70_v33 = vshll.u32 %v682_v32, %v58_v20  ;;  %v73_v35 = vshll.u32 %v683_v34, %v58_v20  ;;  %vm76_vm2 = vcmp.lt.s32.totalorder %v57_v19, 1  ;;  %vm77_vm3 = vcmp.lt.s32.totalorder %v57_v19, 2  ;;  %s539_s23 = sshll.u32 %s685_s22, 4  ;;  %s540_s23 = int_to_ptr.vmem [resolvable:$true] %s539_s23 }
  0x30   :  { %v60_v37 = vshrl.u32 %v679_v26, %v59_v25  ;;  %v62_v38 = vshrl.u32 %v680_v28, %v59_v25  ;;  %v65_v39 = vshrl.u32 %v681_v30, %v59_v25  ;;  %v68_v40 = vshrl.u32 %v682_v32, %v59_v25  ;;  %s647_s24 = scalar_lea.vmem %s540_s23, 256  ;;  %p652_p12 = scmp.lt.s32.totalorder %s540_s23, %s540_s23 }
  0x31   :  { %v71_v41 = vshrl.u32 %v683_v34, %v59_v25  ;;  %v74_v43 = vshrl.u32 %v684_v42, %v59_v25  ;;  %vm79_vm4 = vcmp.lt.s32.totalorder %v57_v19, 4  ;;  %v266_v47 = vsub.s32 32, %v265_v23  ;;  %p648_p11 = scmp.ne.s32.totalorder %s540_s23, %s647_s24  ;;  %p653_p13 = scmp.lt.s32.totalorder %s647_s24, %s647_s24 }
  0x32   :  { %v63_v44 = vor.u32 %v62_v38, %v61_v27  ;;  %v66_v45 = vor.u32 %v65_v39, %v64_v29  ;;  %v69_v46 = vor.u32 %v68_v40, %v67_v31  ;;  %vm78_vm5 = vcmp.lt.s32.totalorder %v57_v19, 3 }
  0x33   :  { %v72_v48 = vor.u32 %v71_v41, %v70_v33  ;;  %v75_v49 = vor.u32 %v74_v43, %v73_v35  ;;  %v268_v50 = vshll.u32 %v679_v26, %v265_v23  ;;  %v271_v58 = vshll.u32 %v680_v28, %v265_v23  ;;  %p654_p0 = por %p653_p13, %p652_p12 }
  0x34   :  { %v80_v51 = vsel %vm76_vm2, %v60_v37, %v63_v44  ;;  %v81_v52 = vsel %vm79_vm4, %v69_v46, 2102212464  ;;  %v84_v53 = vsel %vm76_vm2, %v63_v44, %v66_v45  ;;  %v88_v54 = vsel %vm76_vm2, %v66_v45, %v69_v46 }
  0x35   :  { %v82_v55 = vsel %vm78_vm5, %v66_v45, %v81_v52  ;;  %v85_v56 = vsel %vm79_vm4, %v72_v48, 920167782  ;;  %v89_v57 = vsel %vm79_vm4, %v75_v49, 1326507024  ;;  %v267_v61 = vshrl.u32 %v679_v26, %v266_v47  ;;  %p655_p1 = pnand %p654_p0, %p648_p11 }
  0x36   :  { %v86_v59 = vsel %vm78_vm5, %v69_v46, %v85_v56  ;;  %v90_v60 = vsel %vm78_vm5, %v72_v48, %v89_v57  ;;  %v269_v62 = vshrl.u32 %v680_v28, %v266_v47  ;;  %v83_v63 = vsel %vm77_vm3, %v80_v51, %v82_v55 }
  0x37   :  { %v87_v0 = vsel %vm77_vm3, %v84_v53, %v86_v59  ;;  %v91_v1 = vsel %vm77_vm3, %v88_v54, %v90_v60  ;;  %v272_v5 = vshrl.u32 %v681_v30, %v266_v47  ;;  %v274_v13 = vshll.u32 %v681_v30, %v265_v23 }
  0x38   :  { %v753_v7 = vmul.u32.u64.low %v740_v22, %v91_v1  ;;  %v754_v8 = vmul.u32.u64.high %v740_v22, %v91_v1, %v753_v7  ;;  %v757_v9 = vmul.u32.u64.low %v740_v22, %v87_v0  ;;  %v758_v10 = vmul.u32.u64.high %v740_v22, %v87_v0, %v757_v9 }
  0x39   :  { %v270_v11 = vor.u32 %v269_v62, %v268_v50  ;;  %v273_v12 = vor.u32 %v272_v5, %v271_v58  ;;  %v275_v14 = vshrl.u32 %v682_v32, %v266_v47  ;;  %v277_v15 = vshll.u32 %v682_v32, %v265_v23 }
  0x3a   :  { %v278_v16 = vshrl.u32 %v683_v34, %v266_v47  ;;  %v280_v17 = vshll.u32 %v683_v34, %v265_v23  ;;  %v281_v18 = vshrl.u32 %v684_v42, %v266_v47  ;;  %v99_v19 = vmul.u32 %v740_v22, %v83_v63 }
  0x3b   :  { %v276_v20 = vor.u32 %v275_v14, %v274_v13  ;;  %vm283_vm6 = vcmp.lt.s32.totalorder %v744_v36, 1  ;;  %vm284_vm7 = vcmp.lt.s32.totalorder %v744_v36, 2  ;;  %vm101_vm8 = vc.u32 %v754_v8, %v757_v9 }
  0x3c   :  { %v102_v21 = vadd.s32 1, %v758_v10  ;;  %v279_v25 = vor.u32 %v278_v16, %v277_v15  ;;  %vm285_vm9 = vcmp.lt.s32.totalorder %v744_v36, 3  ;;  %v282_v26 = vor.u32 %v281_v18, %v280_v17 }
  0x3d   :  { %vm286_vm10 = vcmp.lt.s32.totalorder %v744_v36, 4  ;;  %v287_v27 = vsel %vm283_vm6, %v267_v61, %v270_v11  ;;  %v291_v23 = vsel %vm283_vm6, %v270_v11, %v273_v12  ;;  %v295_v30 = vsel %vm283_vm6, %v273_v12, %v276_v20 }
  0x3e   :  { %v103_v28 = vsel %vm101_vm8, %v102_v21, %v758_v10  ;;  %v288_v22 = vsel %vm286_vm10, %v276_v20, 2102212464  ;;  %v292_v29 = vsel %vm286_vm10, %v279_v25, 920167782  ;;  %v296_v34 = vsel %vm286_vm10, %v282_v26, 1326507024 }
  0x3f   :  { %v104_v31 = vadd.s32 %v103_v28, %v99_v19  ;;  %v289_v32 = vsel %vm285_vm9, %v273_v12, %v288_v22  ;;  %v293_v33 = vsel %vm285_vm9, %v276_v20, %v292_v29  ;;  %v297_v38 = vsel %vm285_vm9, %v279_v25, %v296_v34 }
  0x40   :  { %v290_v35 = vsel %vm284_vm7, %v287_v27, %v289_v32  ;;  %v294_v37 = vsel %vm284_vm7, %v291_v23, %v293_v33  ;;  %v298_v40 = vsel %vm284_vm7, %v295_v30, %v297_v38  ;;  %v100_v59 = vadd.s32 %v757_v9, %v754_v8 }
  0x41   :  { %v105_v39 = vadd.s32 536870912, %v104_v31  ;;  %v775_v41 = vmul.u32.u64.low %v742_v24, %v294_v37  ;;  %v776_v42 = vmul.u32.u64.high %v742_v24, %v294_v37, %v775_v41  ;;  %v306_v46 = vmul.u32 %v742_v24, %v290_v35 }
  0x42   :  { %v779_v43 = vmul.u32.u64.low %v742_v24, %v298_v40  ;;  %v780_v44 = vmul.u32.u64.high %v742_v24, %v298_v40, %v779_v43  ;;  %vm136_vm8 = vweird.f32 %v728_v2 }
  0x43   :  { %v106_v45 = vshrl.u32 %v105_v39, 30  ;;  %v309_v48 = vadd.s32 1, %v776_v42 }
  0x44   :  { %vm308_vm11 = vc.u32 %v780_v44, %v775_v41  ;;  %v307_v15 = vadd.s32 %v775_v41, %v780_v44 }
  0x45   :  { %v107_v47 = vshll.u32 %v106_v45, 30  ;;  %v310_v36 = vsel %vm308_vm11, %v309_v48, %v776_v42  ;;  %v130_v20 = vsub.s32 4, %v106_v45 }
  0x46   :  { %v311_v50 = vadd.s32 %v310_v36, %v306_v46 }
  0x47   :  { %v108_v49 = vsub.s32 %v104_v31, %v107_v47  ;;  %v131_v22 = vsel %vm46_vm14, %v130_v20, %v106_v45 }
  0x48   :  { %v312_v52 = vadd.s32 536870912, %v311_v50  ;;  %v133_v32 = vsel %vm45_vm15, 0, %v131_v22  ;;  %v498_v22 = vstv %s816_s12 }
  0x49   :  { %v110_v51 = vsub.s32 0, %v108_v49  ;;  %v240_v35 = vadd.s32 3, %v133_v32  ;;  %v137_v39 = vand.u32 3, %v133_v32 }
  0x4a   :  { %v313_v54 = vshrl.u32 %v312_v52, 30 }
  0x4b   :  { %v553_v53 = vmin.u32 %v110_v51, %v108_v49  ;;  %v241_v40 = vand.u32 3, %v240_v35  ;;  %vm142_vm2 = vcmp.eq.s32.totalorder %v137_v39, 2  ;;  %vm139_vm4 = vcmp.eq.s32.totalorder %v137_v39, 0  ;;  %v43_v51 = vld [vmem:[#allocation6 + $0x10] sm:$0xff] }
  0x4c   :  { %v314_v56 = vshll.u32 %v313_v54, 30  ;;  %v337_v34 = vsub.s32 4, %v313_v54  ;;  %vm138_vm6 = vcmp.lt.s32.totalorder %v137_v39, 2 }
  0x4d   :  { %v112_v55 = vclz %v553_v53  ;;  %vm246_vm3 = vcmp.eq.s32.totalorder %v241_v40, 2  ;;  %vm243_vm5 = vcmp.eq.s32.totalorder %v241_v40, 0  ;;  %vm242_vm7 = vcmp.lt.s32.totalorder %v241_v40, 2 }
  0x4e   :  { %v315_v58 = vsub.s32 %v311_v50, %v314_v56  ;;  %v338_v38 = vsel %vm253_vm0, %v337_v34, %v313_v54  ;;  %v458_v56 = vadd.f32 6371000.0, %v43_v51 }
  0x4f   :  { %v554_v57 = vadd.s32 4294967294, %v112_v55  ;;  %v340_v43 = vsel %vm252_vm1, 0, %v338_v38 }
  0x50   :  { %v317_v60 = vsub.s32 0, %v315_v58  ;;  %v447_v47 = vadd.s32 3, %v340_v43  ;;  %v344_v52 = vand.u32 3, %v340_v43 }
  0x51   :  { %vm555_vm12 = vcmp.lt.s32.totalorder %v554_v57, 0 }
  0x52   :  { %v115_v24 = vsel %vm555_vm12, 0, %v554_v57  ;;  %v561_v0 = vmin.u32 %v317_v60, %v315_v58  ;;  %v448_v53 = vand.u32 3, %v447_v47  ;;  %vm349_vm9 = vcmp.eq.s32.totalorder %v344_v52, 2 }
  0x53   :  { %v116_v61 = vsub.s32 32, %v115_v24  ;;  %v117_v62 = vshll.u32 %v108_v49, %v115_v24  ;;  %v120_v63 = vsub.s32 4294967266, %v115_v24  ;;  %vm346_vm11 = vcmp.eq.s32.totalorder %v344_v52, 0 }
  0x54   :  { %v319_v7 = vclz %v561_v0  ;;  %vm453_vm10 = vcmp.eq.s32.totalorder %v448_v53, 2  ;;  %vm450_vm12 = vcmp.eq.s32.totalorder %v448_v53, 0 }
  0x55   :  { %v118_v1 = vshrl.u32 %v100_v59, %v116_v61  ;;  %v121_v5 = vadd.s32 127, %v120_v63 }
  0x56   :  { %v562_v12 = vadd.s32 4294967294, %v319_v7  ;;  %v470_v7 = vstv %s796_s1 }
  0x57   :  { %v119_v10 = vor.u32 %v118_v1, %v117_v62  ;;  %v122_v11 = vshll.u32 %v121_v5, 23 }
  0x58   :  { %vm563_vm13 = vcmp.lt.s32.totalorder %v562_v12, 0 }
  0x59   :  { %v123_v13 = vor.u32 4788187, %v122_v11  ;;  %v126_v14 = vcvt.s32.f32 %v119_v10  ;;  %v322_v8 = vsel %vm563_vm13, 0, %v562_v12  ;;  %vm343_vm13 = vweird.f32 %v730_v3 }
  0x5a   :  { %v323_v9 = vsub.s32 32, %v322_v8  ;;  %v324_v17 = vshll.u32 %v315_v58, %v322_v8  ;;  %v327_v18 = vsub.s32 4294967266, %v322_v8 }
  0x5b   :  { %v124_v16 = vand.u32 2147483647, %v123_v13 }
  0x5c   :  { %v325_v21 = vshrl.u32 %v307_v15, %v323_v9  ;;  %v328_v25 = vadd.s32 127, %v327_v18  ;;  %v466_v15 = vstv %s801_s5  ;;  %v476_v18 = vstv %s805_s7 }
  0x5d   :  { %v127_v19 = vmul.f32 %v126_v14, %v124_v16  ;;  %v462_v14 = vstv %s799_s4 }
  0x5e   :  { %v326_v27 = vor.u32 %v325_v21, %v324_v17  ;;  %v329_v23 = vshll.u32 %v328_v25, 23  ;;  %v473_v17 = vstv %s803_s6  ;;  %v484_v25 = vstv %s809_s9 }
  0x5f   :  { %v128_v26 = vxor.u32 2147483648, %v127_v19 }
  0x60   :  { %v330_v30 = vor.u32 4788187, %v329_v23  ;;  %v333_v31 = vcvt.s32.f32 %v326_v27  ;;  %v495_v27 = vstv %s814_s11 }
  0x61   :  { %v129_v28 = vsel %vm46_vm14, %v128_v26, %v127_v19  ;;  %vm345_vm14 = vcmp.lt.s32.totalorder %v344_v52, 2  ;;  %v480_v19 = vstv %s807_s8  ;;  %v487_v26 = vstv %s811_s10 }
  0x62   :  { %v132_v29 = vsel %vm45_vm15, %v728_v2, %v129_v28  ;;  %v331_v33 = vand.u32 2147483647, %v330_v30  ;;  %vm449_vm15 = vcmp.lt.s32.totalorder %v448_v53, 2  ;;  %v512_v30 = vstv %s819_s13 }
  0x63   :  { %605 = vcosq.f32 %v132_v29  ;;  %v520_v52 = vstv %s583_s20  ;;  %v529_v53 = vstv %s585_s21 }
  0x64   :  { %607 = vsinq.f32 %v132_v29  ;;  %v334_v37 = vmul.f32 %v333_v31, %v331_v33 }
  0x66   :  { %v335_v4 = vxor.u32 2147483648, %v334_v37 }
  0x68   :  { %v336_v41 = vsel %vm253_vm0, %v335_v4, %v334_v37  ;;  %v491_v37 = vstv %s575_s14  ;;  %v502_v4 = vstv %s578_s15 }
  0x69   :  { %v339_v42 = vsel %vm252_vm1, %v730_v3, %v336_v41 }
  0x6a   :  { %609 = vcosq.f32 %v339_v42 }
  0x6b   :  { %611 = vsinq.f32 %v339_v42 }
  0x6d   :  { %v606_v44 = vpop.eup %605 }
  0x6e   :  { %v608_v45 = vpop.eup %607  ;;  %v143_v46 = vxor.u32 2147483648, %v606_v44 }
  0x6f   :  { %v140_v48 = vxor.u32 2147483648, %v608_v45 }
  0x70   :  { %v144_v6 = vsel %vm142_vm2, %v143_v46, %v608_v45  ;;  %v248_v49 = vsel %vm246_vm3, %v143_v46, %v608_v45  ;;  %v506_v45 = vstv %s579_s16  ;;  %v509_v46 = vstv %s580_s17 }
  0x71   :  { %v141_v36 = vsel %vm139_vm4, %v606_v44, %v140_v48  ;;  %v245_v50 = vsel %vm243_vm5, %v606_v44, %v140_v48 }
  0x72   :  { %v145_v54 = vsel %vm138_vm6, %v141_v36, %v144_v6  ;;  %v249_v55 = vsel %vm242_vm7, %v245_v50, %v248_v49  ;;  %v517_v49 = vstv %s582_s18  ;;  %v526_v36 = vstv %s584_s19 }
  0x73   :  { %v146_v58 = vsel %vm136_vm8, nan, %v145_v54  ;;  %v250_v59 = vsel %vm136_vm8, nan, %v249_v55 }
  0x74   :  { %v610_v57 = vpop.eup %609  ;;  %v459_v63 = vmul.f32 %v458_v56, %v146_v58  ;;  %v468_v0 = vmul.f32 %v458_v56, %v250_v59 }
  0x75   :  { %v612_v2 = vpop.eup %611  ;;  %v350_v24 = vxor.u32 2147483648, %v610_v57 }
  0x76   :  { %v347_v60 = vxor.u32 2147483648, %v612_v2  ;;  %v471_v9 = vsub.f32 %v468_v0, %v470_v7 }
  0x77   :  { %v351_v61 = vsel %vm349_vm9, %v350_v24, %v612_v2  ;;  %v455_v62 = vsel %vm453_vm10, %v350_v24, %v612_v2 }
  0x78   :  { %v348_v1 = vsel %vm346_vm11, %v610_v57, %v347_v60  ;;  %v452_v5 = vsel %vm450_vm12, %v610_v57, %v347_v60  ;;  %v481_v28 = vmul.f32 %v480_v19, %v471_v9  ;;  %v492_v40 = vmul.f32 %v491_v37, %v471_v9 }
  0x79   :  { %v352_v10 = vsel %vm345_vm14, %v348_v1, %v351_v61  ;;  %v456_v11 = vsel %vm449_vm15, %v452_v5, %v455_v62  ;;  %v503_v42 = vmul.f32 %v502_v4, %v471_v9 }
  0x7a   :  { %v353_v12 = vsel %vm343_vm13, nan, %v352_v10  ;;  %v457_v13 = vsel %vm343_vm13, nan, %v456_v11 }
  0x7b   :  { %v460_v16 = vmul.f32 %v459_v63, %v353_v12  ;;  %v464_v8 = vmul.f32 %v459_v63, %v457_v13 }
  0x7d   :  { %v463_v20 = vsub.f32 %v460_v16, %v462_v14  ;;  %v467_v21 = vsub.f32 %v464_v8, %v466_v15 }
  0x7f   :  { %v474_v3 = vmul.f32 %v473_v17, %v463_v20  ;;  %v477_v23 = vmul.f32 %v476_v18, %v467_v21  ;;  %v485_v31 = vmul.f32 %v484_v25, %v463_v20  ;;  %v488_v32 = vmul.f32 %v487_v26, %v467_v21 }
  0x80   :  { %v496_v33 = vmul.f32 %v495_v27, %v463_v20  ;;  %v499_v34 = vmul.f32 %v498_v22, %v467_v21 }
  0x81   :  { %v478_v29 = vadd.f32 %v477_v23, %v474_v3  ;;  %v489_v39 = vadd.f32 %v488_v32, %v485_v31 }
  0x82   :  { %v500_v41 = vadd.f32 %v499_v34, %v496_v33 }
  0x83   :  { %v482_v35 = vadd.f32 %v481_v28, %v478_v29  ;;  %v493_v43 = vadd.f32 %v492_v40, %v489_v39 }
  0x84   :  { %v504_v44 = vadd.f32 %v503_v42, %v500_v41 }
  0x85   :  { %v513_v38 = vadd.f32 %v512_v30, %v482_v35  ;;  %v507_v47 = vadd.f32 %v506_v45, %v493_v43 }
  0x86   :  { %v510_v48 = vadd.f32 %v509_v46, %v504_v44 }
  0x87   :  { %613 = vrcp.f32 %v513_v38 }
  0x91   :  { %v614_v6 = vpop.eup %613 }
  0x92   :  { %v515_v50 = vmul.f32 %v614_v6, %v507_v47  ;;  %v524_v51 = vmul.f32 %v614_v6, %v510_v48 }
  0x94   :  { %v518_v54 = vmul.f32 %v517_v49, %v515_v50  ;;  %v527_v55 = vmul.f32 %v526_v36, %v524_v51 }
  0x96   :  { %v521_v56 = vadd.f32 %v520_v52, %v518_v54  ;;  %v530_v57 = vadd.f32 %v529_v53, %v527_v55 }
  0x98   :  { %v522_v58 = vmul.f32 0.00052083336, %v521_v56  ;;  %v531_v59 = vmul.f32 0.0009259259, %v530_v57 }
  0x9a   :  { %523 = vst [vmem:[#allocation7] sm:$0xff] %v522_v58  ;;  %533 = vst [vmem:[#allocation7 + $0x8] sm:$0xff] %v531_v59 }
  0x9b   :  { %658 = shalt.err (!%p655_p1)
}
  0x9c   :  { %s659_s27 = scalar_lea.hbm %s852_s2, 256 }
  0x9d   :  { %p660_p2 = scmp.ne.s32.totalorder %s852_s2, %s659_s27  ;;  %p663_p3 = scmp.lt.u32.totalorder %s659_s27, %s852_s2 }
  0x9f   :  { %p665_p4 = pnand %p663_p3, %p660_p2 }
  0xa1   :  { %668 = shalt.err (!%p665_p4)
}
  0xa2   :  { %545 = dma.vmem_to_hbm [thread:$0]  %s540_s23, 256, %s852_s2, [#allocation4], %s677_s0, %s677_s0, %s678_s29  }
  0xa3   :  { %673 = dma.done.wait [#allocation4], 256  }
  0xa4   :  { %674 = vsyncadd [#allocation4], 4294967040 }
  0xa5   :  { %549 = vsyncpa [#allocation3], 1 }
  0xa6   :  { %550 = vsyncpa [#allocation4], 1 }
  0xa7   :  { %551 = vsyncpa [#allocation5], 1 }

</bundles_post_ra>
